<compile_context>
chip_gen: v7x
topology: tpu7x:2x2x1
jax: 0.10.0
libtpu: 0.0.40
codegen_flags: <defaults>
</compile_context>

<pallas_src>
import jax
import jax.numpy as jnp
from jax.experimental import pallas as pl
from jax.experimental.pallas import tpu as pltpu

STATE_DIM = 24
ACTION_DIM = 4
HIDDEN = 256
OUT_COLS = 3 * ACTION_DIM  # [out | mean | std] packed in one output slab


def _round_up(x, m):
    return ((x + m - 1) // m) * m


def nn_pi_lo_kernel(state_ref, w1_ref, b1_ref, w2_ref, b2_ref, w3_ref, b3_ref,
                    noise_ref, out_ref):
    # matmul operands in bf16, accumulation + all elementwise epilogue in f32
    x = state_ref[...].astype(jnp.bfloat16)                       # (bb, 24)

    h1 = jnp.dot(x, w1_ref[...], preferred_element_type=jnp.float32) + b1_ref[...]
    h1 = jnp.maximum(h1, 0.0)                                     # (bb, 256) f32

    h2 = jnp.dot(h1.astype(jnp.bfloat16), w2_ref[...],
                 preferred_element_type=jnp.float32) + b2_ref[...]
    h2 = jnp.maximum(h2, 0.0)                                     # (bb, 256) f32

    a = jnp.dot(h2.astype(jnp.bfloat16), w3_ref[...],
                preferred_element_type=jnp.float32) + b3_ref[...]  # (bb, 8) f32

    mean = a[:, :ACTION_DIM]
    # NOTE: faithful to the reference module -- no clamp on log_std before exp.
    std = jnp.exp(a[:, ACTION_DIM:])

    # torch.normal(mean, std) reparameterized with externally supplied eps ~ N(0,1)
    out = jnp.tanh(mean + std * noise_ref[...])

    # three direct sliced stores (no concatenate / cross-lane shuffle)
    out_ref[:, 0:ACTION_DIM] = out
    out_ref[:, ACTION_DIM:2 * ACTION_DIM] = mean
    out_ref[:, 2 * ACTION_DIM:3 * ACTION_DIM] = std


def prepare_params(w1, b1, w2, b2, w3, b3):
    """One-time cast of weights to bf16 (hoisted out of the per-call path).

    bf16 weights halve weight DMA and hit the native MXU dtype; biases stay
    f32 (added after the f32 accumulation).  Note: bf16 operands deviate from
    the original f32 PyTorch module at ~1e-2 rtol (amplified through exp for
    std); keep w3/w1 in f32 if bit-closer parity is required.
    """
    return (w1.astype(jnp.bfloat16), b1,
            w2.astype(jnp.bfloat16), b2,
            w3.astype(jnp.bfloat16), b3)


def nn_pi_lo_forward(state, w1b, b1, w2b, b2, w3b, b3, noise, *, block_b=1024):
    """Returns (output, mean, std), each (B, ACTION_DIM) float32.

    Weights must be pre-cast via prepare_params (w1b/w2b/w3b bf16, biases f32).
    """
    B = state.shape[0]

    # batch-block selection:
    #   tiny batch        -> one 16-aligned block
    #   medium (<=1024)   -> two blocks so both TCs run on v7x
    #   large             -> 1024-row blocks, ragged last block (no wrapper pad)
    if B <= 64:
        bb = _round_up(max(B, 16), 16)
    elif B <= block_b:
        bb = _round_up(pl.cdiv(B, 2), 16)
    else:
        bb = block_b
    grid = (pl.cdiv(B, bb),)

    const2 = lambda i: (0, 0)   # weights/biases: same block every step (VMEM-resident)

    slab = pl.pallas_call(
        nn_pi_lo_kernel,
        out_shape=jax.ShapeDtypeStruct((B, OUT_COLS), jnp.float32),
        grid=grid,
        in_specs=[
            pl.BlockSpec((bb, STATE_DIM), lambda i: (i, 0)),      # state (f32)
            pl.BlockSpec((STATE_DIM, HIDDEN), const2),            # w1 (bf16)
            pl.BlockSpec((1, HIDDEN), const2),                    # b1 (f32)
            pl.BlockSpec((HIDDEN, HIDDEN), const2),               # w2 (bf16)
            pl.BlockSpec((1, HIDDEN), const2),                    # b2 (f32)
            pl.BlockSpec((HIDDEN, 2 * ACTION_DIM), const2),       # w3 (bf16)
            pl.BlockSpec((1, 2 * ACTION_DIM), const2),            # b3 (f32)
            pl.BlockSpec((bb, ACTION_DIM), lambda i: (i, 0)),     # noise (f32)
        ],
        out_specs=pl.BlockSpec((bb, OUT_COLS), lambda i: (i, 0)),
        compiler_params=pltpu.CompilerParams(
            dimension_semantics=("parallel",),       # shard batch blocks across TCs
            vmem_limit_bytes=32 * 1024 * 1024,       # safe on v5e, under v7x's 64 MiB
        ),
    )(state, w1b, b1, w2b, b2, w3b, b3, noise)

    out = slab[:, 0:ACTION_DIM]
    mean = slab[:, ACTION_DIM:2 * ACTION_DIM]
    std = slab[:, 2 * ACTION_DIM:3 * ACTION_DIM]
    return out, mean, std


def init_params(key):
    """Synthetic init mirroring the module's parameter shapes.

    PyTorch nn.Linear stores weight as (out, in); we keep (in, out) so the
    kernel does plain x @ W.  l1/l2 weights ~ U(-0.5, 0.5) as in nn.init.uniform_;
    l3 weight and biases follow the default nn.Linear bound 1/sqrt(fan_in).
    """
    k1, k2, k3, kb1, kb2, kb3 = jax.random.split(key, 6)
    w1 = jax.random.uniform(k1, (STATE_DIM, HIDDEN), jnp.float32, -0.5, 0.5)
    w2 = jax.random.uniform(k2, (HIDDEN, HIDDEN), jnp.float32, -0.5, 0.5)
    bound3 = 1.0 / (HIDDEN ** 0.5)
    w3 = jax.random.uniform(k3, (HIDDEN, 2 * ACTION_DIM), jnp.float32, -bound3, bound3)
    b1 = jax.random.uniform(kb1, (1, HIDDEN), jnp.float32,
                            -1.0 / (STATE_DIM ** 0.5), 1.0 / (STATE_DIM ** 0.5))
    b2 = jax.random.uniform(kb2, (1, HIDDEN), jnp.float32, -bound3, bound3)
    b3 = jax.random.uniform(kb3, (1, 2 * ACTION_DIM), jnp.float32, -bound3, bound3)
    return w1, b1, w2, b2, w3, b3


def reference(state, w1, b1, w2, b2, w3, b3, noise):
    """Pure-JAX reference using the same bf16-operand / f32-accum math."""
    bf = jnp.bfloat16
    h1 = jnp.maximum(
        jnp.dot(state.astype(bf), w1.astype(bf), preferred_element_type=jnp.float32) + b1, 0.0)
    h2 = jnp.maximum(
        jnp.dot(h1.astype(bf), w2.astype(bf), preferred_element_type=jnp.float32) + b2, 0.0)
    a = jnp.dot(h2.astype(bf), w3.astype(bf), preferred_element_type=jnp.float32) + b3
    mean = a[:, :ACTION_DIM]
    std = jnp.exp(a[:, ACTION_DIM:])
    out = jnp.tanh(mean + std * noise)
    return out, mean, std


if __name__ == "__main__":
    key = jax.random.PRNGKey(0)
    kp, ks = jax.random.split(key)
    w1, b1, w2, b2, w3, b3 = init_params(kp)
    # one-time weight cast (kept out of the per-call path)
    w1b, b1, w2b, b2, w3b, b3 = prepare_params(w1, b1, w2, b2, w3, b3)

    # exercise: tiny single block, two-block medium batch, ragged gridded batch
    for batch in (5, 200, 1040):
        kb = jax.random.fold_in(ks, batch)
        ks_b, kn_b = jax.random.split(kb)
        state = jax.random.normal(ks_b, (batch, STATE_DIM), jnp.float32)
        noise = jax.random.normal(kn_b, (batch, ACTION_DIM), jnp.float32)  # eps for torch.normal

        out, mean, std = nn_pi_lo_forward(state, w1b, b1, w2b, b2, w3b, b3, noise)
        jax.block_until_ready((out, mean, std))

        r_out, r_mean, r_std = reference(state, w1, b1, w2, b2, w3, b3, noise)

        assert out.shape == (batch, ACTION_DIM)
        assert mean.shape == (batch, ACTION_DIM)
        assert std.shape == (batch, ACTION_DIM)
        assert jnp.allclose(mean, r_mean, rtol=1e-2, atol=1e-3), f"mean mismatch @B={batch}"
        assert jnp.allclose(std, r_std, rtol=1e-2, atol=1e-3), f"std mismatch @B={batch}"
        assert jnp.allclose(out, r_out, rtol=1e-2, atol=1e-3), f"out mismatch @B={batch}"

    print("KERNEL_OK")
</pallas_src>

<mosaic_0001>
module attributes {stable_mosaic.version = 11 : i64} {
  func.func @nn_pi_lo_kernel(%arg0: i32, %arg1: memref<16x24xf32, #tpu.memory_space<vmem>>, %arg2: memref<24x256xbf16, #tpu.memory_space<vmem>>, %arg3: memref<1x256xf32, #tpu.memory_space<vmem>>, %arg4: memref<256x256xbf16, #tpu.memory_space<vmem>>, %arg5: memref<1x256xf32, #tpu.memory_space<vmem>>, %arg6: memref<256x8xbf16, #tpu.memory_space<vmem>>, %arg7: memref<1x8xf32, #tpu.memory_space<vmem>>, %arg8: memref<16x4xf32, #tpu.memory_space<vmem>>, %arg9: memref<16x12xf32, #tpu.memory_space<vmem>>) attributes {dimension_semantics = [#tpu.dimension_semantics<parallel>], iteration_bounds = array<i64: 1>, scalar_prefetch = 0 : i64, scratch_operands = 0 : i64, tpu.core_type = #tpu.core_type<tc>, window_params = [{transform_indices = @transform_0, window_bounds = array<i64: 16, 24>}, {pipeline_mode = #tpu.pipeline_mode<synchronous>, transform_indices = @transform_1, window_bounds = array<i64: 24, 256>}, {pipeline_mode = #tpu.pipeline_mode<synchronous>, transform_indices = @transform_2, window_bounds = array<i64: 1, 256>}, {pipeline_mode = #tpu.pipeline_mode<synchronous>, transform_indices = @transform_3, window_bounds = array<i64: 256, 256>}, {pipeline_mode = #tpu.pipeline_mode<synchronous>, transform_indices = @transform_4, window_bounds = array<i64: 1, 256>}, {pipeline_mode = #tpu.pipeline_mode<synchronous>, transform_indices = @transform_5, window_bounds = array<i64: 256, 8>}, {pipeline_mode = #tpu.pipeline_mode<synchronous>, transform_indices = @transform_6, window_bounds = array<i64: 1, 8>}, {transform_indices = @transform_7, window_bounds = array<i64: 16, 4>}, {transform_indices = @transform_8, window_bounds = array<i64: 16, 12>}]} {
    %c0 = arith.constant 0 : index
    %c0_0 = arith.constant 0 : index
    %0 = vector.load %arg1[%c0, %c0_0] : memref<16x24xf32, #tpu.memory_space<vmem>>, vector<16x24xf32>
    %1 = arith.truncf %0 : vector<16x24xf32> to vector<16x24xbf16>
    %c0_1 = arith.constant 0 : index
    %c0_2 = arith.constant 0 : index
    %2 = vector.load %arg2[%c0_1, %c0_2] : memref<24x256xbf16, #tpu.memory_space<vmem>>, vector<24x256xbf16>
    %cst = arith.constant dense<0.000000e+00> : vector<16x256xf32>
    %3 = tpu.matmul %1, %2, %cst {dimension_numbers = #tpu.dot_dimension_numbers<[1], [0], [0], [1], [0, 0, 1, 1], [], []>} : vector<16x24xbf16>, vector<24x256xbf16>, vector<16x256xf32> -> vector<16x256xf32>
    %c0_3 = arith.constant 0 : index
    %c0_4 = arith.constant 0 : index
    %4 = vector.load %arg3[%c0_3, %c0_4] : memref<1x256xf32, #tpu.memory_space<vmem>>, vector<1x256xf32>
    %5 = vector.broadcast %4 : vector<1x256xf32> to vector<16x256xf32>
    %6 = arith.addf %3, %5 : vector<16x256xf32>
    %cst_5 = arith.constant 0.000000e+00 : f32
    %7 = vector.broadcast %cst_5 : f32 to vector<16x256xf32>
    %8 = arith.maximumf %6, %7 : vector<16x256xf32>
    %9 = arith.truncf %8 : vector<16x256xf32> to vector<16x256xbf16>
    %c0_6 = arith.constant 0 : index
    %c0_7 = arith.constant 0 : index
    %10 = vector.load %arg4[%c0_6, %c0_7] : memref<256x256xbf16, #tpu.memory_space<vmem>>, vector<256x256xbf16>
    %cst_8 = arith.constant dense<0.000000e+00> : vector<16x256xf32>
    %11 = tpu.matmul %9, %10, %cst_8 {dimension_numbers = #tpu.dot_dimension_numbers<[1], [0], [0], [1], [0, 0, 1, 1], [], []>} : vector<16x256xbf16>, vector<256x256xbf16>, vector<16x256xf32> -> vector<16x256xf32>
    %c0_9 = arith.constant 0 : index
    %c0_10 = arith.constant 0 : index
    %12 = vector.load %arg5[%c0_9, %c0_10] : memref<1x256xf32, #tpu.memory_space<vmem>>, vector<1x256xf32>
    %13 = vector.broadcast %12 : vector<1x256xf32> to vector<16x256xf32>
    %14 = arith.addf %11, %13 : vector<16x256xf32>
    %cst_11 = arith.constant 0.000000e+00 : f32
    %15 = vector.broadcast %cst_11 : f32 to vector<16x256xf32>
    %16 = arith.maximumf %14, %15 : vector<16x256xf32>
    %17 = arith.truncf %16 : vector<16x256xf32> to vector<16x256xbf16>
    %c0_12 = arith.constant 0 : index
    %c0_13 = arith.constant 0 : index
    %18 = vector.load %arg6[%c0_12, %c0_13] : memref<256x8xbf16, #tpu.memory_space<vmem>>, vector<256x8xbf16>
    %cst_14 = arith.constant dense<0.000000e+00> : vector<16x8xf32>
    %19 = tpu.matmul %17, %18, %cst_14 {dimension_numbers = #tpu.dot_dimension_numbers<[1], [0], [0], [1], [0, 0, 1, 1], [], []>} : vector<16x256xbf16>, vector<256x8xbf16>, vector<16x8xf32> -> vector<16x8xf32>
    %c0_15 = arith.constant 0 : index
    %c0_16 = arith.constant 0 : index
    %20 = vector.load %arg7[%c0_15, %c0_16] : memref<1x8xf32, #tpu.memory_space<vmem>>, vector<1x8xf32>
    %21 = vector.broadcast %20 : vector<1x8xf32> to vector<16x8xf32>
    %22 = arith.addf %19, %21 : vector<16x8xf32>
    %23 = vector.extract_strided_slice %22 {offsets = [0, 0], sizes = [16, 4], strides = [1, 1]} : vector<16x8xf32> to vector<16x4xf32>
    %24 = vector.extract_strided_slice %22 {offsets = [0, 4], sizes = [16, 4], strides = [1, 1]} : vector<16x8xf32> to vector<16x4xf32>
    %25 = math.exp %24 : vector<16x4xf32>
    %c0_17 = arith.constant 0 : index
    %c0_18 = arith.constant 0 : index
    %26 = vector.load %arg8[%c0_17, %c0_18] : memref<16x4xf32, #tpu.memory_space<vmem>>, vector<16x4xf32>
    %27 = arith.mulf %25, %26 : vector<16x4xf32>
    %28 = arith.addf %23, %27 : vector<16x4xf32>
    %29 = math.tanh %28 : vector<16x4xf32>
    %c0_19 = arith.constant 0 : index
    %c0_20 = arith.constant 0 : index
    %30 = vector.load %arg9[%c0_19, %c0_20] : memref<16x12xf32, #tpu.memory_space<vmem>>, vector<16x4xf32>
    tpu.vector_store %arg9[%c0_19, %c0_20], %29 {strides = array<i32>} : memref<16x12xf32, #tpu.memory_space<vmem>>, vector<16x4xf32>,
    %c0_21 = arith.constant 0 : index
    %c4 = arith.constant 4 : index
    %31 = vector.load %arg9[%c0_21, %c4] : memref<16x12xf32, #tpu.memory_space<vmem>>, vector<16x4xf32>
    tpu.vector_store %arg9[%c0_21, %c4], %23 {strides = array<i32>} : memref<16x12xf32, #tpu.memory_space<vmem>>, vector<16x4xf32>,
    %c0_22 = arith.constant 0 : index
    %c8 = arith.constant 8 : index
    %32 = vector.load %arg9[%c0_22, %c8] : memref<16x12xf32, #tpu.memory_space<vmem>>, vector<16x4xf32>
    tpu.vector_store %arg9[%c0_22, %c8], %25 {strides = array<i32>} : memref<16x12xf32, #tpu.memory_space<vmem>>, vector<16x4xf32>,
    return
  }
  func.func @transform_0(%arg0: i32) -> (i32, i32) {
    %c0_i32 = arith.constant 0 : i32
    %c0_i32_0 = arith.constant 0 : i32
    return %arg0, %c0_i32 : i32, i32
  }
  func.func @transform_1(%arg0: i32) -> (i32, i32) {
    %c0_i32 = arith.constant 0 : i32
    %c0_i32_0 = arith.constant 0 : i32
    %c0_i32_1 = arith.constant 0 : i32
    return %c0_i32, %c0_i32_0 : i32, i32
  }
  func.func @transform_2(%arg0: i32) -> (i32, i32) {
    %c0_i32 = arith.constant 0 : i32
    %c0_i32_0 = arith.constant 0 : i32
    %c0_i32_1 = arith.constant 0 : i32
    return %c0_i32, %c0_i32_0 : i32, i32
  }
  func.func @transform_3(%arg0: i32) -> (i32, i32) {
    %c0_i32 = arith.constant 0 : i32
    %c0_i32_0 = arith.constant 0 : i32
    %c0_i32_1 = arith.constant 0 : i32
    return %c0_i32, %c0_i32_0 : i32, i32
  }
  func.func @transform_4(%arg0: i32) -> (i32, i32) {
    %c0_i32 = arith.constant 0 : i32
    %c0_i32_0 = arith.constant 0 : i32
    %c0_i32_1 = arith.constant 0 : i32
    return %c0_i32, %c0_i32_0 : i32, i32
  }
  func.func @transform_5(%arg0: i32) -> (i32, i32) {
    %c0_i32 = arith.constant 0 : i32
    %c0_i32_0 = arith.constant 0 : i32
    %c0_i32_1 = arith.constant 0 : i32
    return %c0_i32, %c0_i32_0 : i32, i32
  }
  func.func @transform_6(%arg0: i32) -> (i32, i32) {
    %c0_i32 = arith.constant 0 : i32
    %c0_i32_0 = arith.constant 0 : i32
    %c0_i32_1 = arith.constant 0 : i32
    return %c0_i32, %c0_i32_0 : i32, i32
  }
  func.func @transform_7(%arg0: i32) -> (i32, i32) {
    %c0_i32 = arith.constant 0 : i32
    %c0_i32_0 = arith.constant 0 : i32
    return %arg0, %c0_i32 : i32, i32
  }
  func.func @transform_8(%arg0: i32) -> (i32, i32) {
    %c0_i32 = arith.constant 0 : i32
    %c0_i32_0 = arith.constant 0 : i32
    return %arg0, %c0_i32 : i32, i32
  }
}

</mosaic_0001>

<bundles_post_ra>
// kernel: tpu_custom_call.1
= control target key start
LH: loop header
LB: loop body
LE: loop exit
PB: predicated region body
PF: predicated region fallthrough
CT: control target
= control target key end

     0   :  { %13 = vsyncpa [#allocation3], 0  ;;  %s1012_s0 = inlined_call_operand.vmem [shape: f32[5,24], index: 0, kind: input, shape index: {}]   ;;  %s1013_s1 = inlined_call_operand.vmem [shape: bf16[24,256], index: 1, kind: input, shape index: {}]   ;;  %s1014_s2 = inlined_call_operand.vmem [shape: f32[1,256], index: 2, kind: input, shape index: {}]   ;;  %s1015_s3 = inlined_call_operand.hbm [shape: bf16[256,256], index: 3, kind: input, shape index: {}]   ;;  %s1016_s4 = inlined_call_operand.vmem [shape: f32[1,256], index: 4, kind: input, shape index: {}]   ;;  %s1017_s5 = inlined_call_operand.vmem [shape: bf16[256,8], index: 5, kind: input, shape index: {}]   ;;  %s1018_s6 = inlined_call_operand.vmem [shape: f32[1,8], index: 6, kind: input, shape index: {}]   ;;  %s1019_s7 = inlined_call_operand.vmem [shape: f32[5,4], index: 7, kind: input, shape index: {}]   ;;  %s1020_s8 = inlined_call_operand.hbm [shape: f32[5,12], index: 8, kind: output, shape index: {}]  }
   0x1   :  { %14 = vsyncpa [#allocation4], 0  ;;  %s846_s27 = smov [#allocation2]   ;;  %s798_s9 = scalar_lea.hbm %s1015_s3, 4096 }
   0x2   :  { %s26_s28 = sshll.u32 %s846_s27, 4  ;;  %p799_p0 = scmp.ne.s32.totalorder %s1015_s3, %s798_s9  ;;  %s27_s28 = int_to_ptr.vmem [resolvable:$true] %s26_s28 }
   0x3   :  { %p802_p1 = scmp.lt.u32.totalorder %s798_s9, %s1015_s3 }
   0x5   :  { %p804_p2 = pnand %p802_p1, %p799_p0 }
   0x7   :  { %807 = shalt.err (!%p804_p2)
}
   0x8   :  { %s808_s14 = scalar_lea.vmem %s27_s28, 4096  ;;  %p813_p4 = scmp.lt.s32.totalorder %s27_s28, %s27_s28 }
   0x9   :  { %p809_p3 = scmp.ne.s32.totalorder %s27_s28, %s808_s14  ;;  %p814_p5 = scmp.lt.s32.totalorder %s808_s14, %s808_s14 }
   0xb   :  { %p815_p6 = por %p814_p5, %p813_p4 }
   0xd   :  { %p816_p7 = pnand %p815_p6, %p809_p3 }
   0xf   :  { %819 = shalt.err (!%p816_p7)
}
  0x10   :  { %s847_s15 = smov 128   ;;  %s848_s16 = smov 8  }
  0x11   :  { %32 = dma.hbm_to_vmem [thread:$0]  %s1015_s3, 4096, %s27_s28, [#allocation3], %s847_s15, %s847_s15, %s848_s16  }
  0x12   :  { %842 = dma.done.wait [#allocation3], 4096  }
  0x13   :  { %843 = vsyncadd [#allocation3], 4294963200  ;;  %v849_v0 = vmov 0   ;;  %v721_v1 = vld [vmem:[%s1013_s1 + $0x4] ss:$8 sps:$4 sm:$0xff]   ;;  %v50_v3 = vld [vmem:[%s1013_s1 + $0x10] sm:$0xff]  ;;  %v53_v53 = vlaneseq }
  0x14   :  { %121 = vmatprep.mubr.bf16.mxu0 %v849_v0  ;;  %v723_v2 = vld [vmem:[%s1013_s1] ss:$8 sps:$4 sm:$0xff]   ;;  %vm82_vm0 = vcmask 1043456   ;;  %89 = vmatprep.subr.bf16.mxu0 %v721_v1  ;;  %v640_v5 = vcombine.high %v50_v3, %v50_v3  ;;  %v639_v6 = vcombine.low %v50_v3, %v50_v3  ;;  %v726_v8 = vld [vmem:[#allocation2 + $0x4] ss:$8 sps:$4 sm:$0xff]   ;;  %vm78_vm1 = vcmask 195584  }
  0x15   :  { %v45_v4 = vld [vmem:[%s1012_s0] sm:$0xff]  ;;  %v46_v7 = vld [vmem:[%s1012_s0 + $0x8] sm:$0xff]  ;;  %90 = vmatpush1.bf16.msra.mxu0 %v723_v2  ;;  %v729_v11 = vld [vmem:[#allocation2 + $0x14] ss:$8 sps:$4 sm:$0xff]   ;;  %342 = vmatprep.subr.bf16.mxu1 %v726_v8  ;;  %v54_v54 = vshrl.u32 %v53_v53, 7  ;;  %s850_s18 = smov 4  }
  0x16   :  { %v728_v9 = vld [vmem:[#allocation2] ss:$8 sps:$4 sm:$0xff]   ;;  %641 = vmatprep.subr.msk.bf16.mxu0 %vm82_vm0, %v640_v5  ;;  %v84_v10 = vsel %vm82_vm0, %v639_v6, 0  ;;  %v47_v12 = vpack.c.bf16 %v46_v7, %v45_v4  ;;  %v731_v13 = vld [vmem:[#allocation2 + $0x10] ss:$8 sps:$4 sm:$0xff]   ;;  %vm595_vm2 = vcmask 31744  }
  0x17   :  { %343 = vmatpush1.bf16.msra.mxu1 %v728_v9  ;;  %v732_v14 = vld [vmem:[#allocation2 + $0x24] ss:$8 sps:$4 sm:$0xff]   ;;  %v734_v15 = vld [vmem:[#allocation2 + $0x20] ss:$8 sps:$4 sm:$0xff]   ;;  %v735_v16 = vld [vmem:[#allocation2 + $0x34] ss:$8 sps:$4 sm:$0xff]  }
  0x18   :  { %344 = vmatprep.subr.bf16.mxu1 %v729_v11  ;;  %v737_v17 = vld [vmem:[#allocation2 + $0x30] ss:$8 sps:$4 sm:$0xff]   ;;  %v738_v18 = vld [vmem:[#allocation2 + $0x44] ss:$8 sps:$4 sm:$0xff]   ;;  %v740_v19 = vld [vmem:[#allocation2 + $0x40] ss:$8 sps:$4 sm:$0xff]  }
  0x19   :  { %92 = vmatpush1.bf16.msra.mxu0 %v84_v10  ;;  %v741_v20 = vld [vmem:[#allocation2 + $0x54] ss:$8 sps:$4 sm:$0xff]   ;;  %v743_v21 = vld [vmem:[#allocation2 + $0x50] ss:$8 sps:$4 sm:$0xff]   ;;  %v744_v22 = vld [vmem:[#allocation2 + $0x64] ss:$8 sps:$4 sm:$0xff]  }
  0x1a   :  { %v746_v23 = vld [vmem:[#allocation2 + $0x60] ss:$8 sps:$4 sm:$0xff]   ;;  %v747_v24 = vld [vmem:[#allocation2 + $0x74] ss:$8 sps:$4 sm:$0xff]   ;;  %v749_v25 = vld [vmem:[#allocation2 + $0x70] ss:$8 sps:$4 sm:$0xff]  }
  0x1b   :  { %345 = vmatpush1.bf16.msra.mxu1 %v731_v13  ;;  %v750_v26 = vld [vmem:[#allocation2 + $0x84] ss:$8 sps:$4 sm:$0xff]   ;;  %v752_v27 = vld [vmem:[#allocation2 + $0x80] ss:$8 sps:$4 sm:$0xff]   ;;  %v753_v28 = vld [vmem:[#allocation2 + $0x94] ss:$8 sps:$4 sm:$0xff]  }
  0x1c   :  { %642 = vmatmul.mubr.msk.bf16.vlgmr.msra.gmra.mrb[0].mxu0 %vm78_vm1, %v47_v12  ;;  %346 = vmatprep.subr.bf16.mxu1 %v732_v14  ;;  %v755_v29 = vld [vmem:[#allocation2 + $0x90] ss:$8 sps:$4 sm:$0xff]   ;;  %v756_v30 = vld [vmem:[#allocation2 + $0xa4] ss:$8 sps:$4 sm:$0xff]   ;;  %v758_v31 = vld [vmem:[#allocation2 + $0xa0] ss:$8 sps:$4 sm:$0xff]  }
  0x1d   :  { %v759_v32 = vld [vmem:[#allocation2 + $0xb4] ss:$8 sps:$4 sm:$0xff]   ;;  %v761_v33 = vld [vmem:[#allocation2 + $0xb0] ss:$8 sps:$4 sm:$0xff]   ;;  %v762_v34 = vld [vmem:[#allocation2 + $0xc4] ss:$8 sps:$4 sm:$0xff]  }
  0x1e   :  { %v764_v35 = vld [vmem:[#allocation2 + $0xc0] ss:$8 sps:$4 sm:$0xff]   ;;  %v765_v36 = vld [vmem:[#allocation2 + $0xd4] ss:$8 sps:$4 sm:$0xff]   ;;  %v767_v37 = vld [vmem:[#allocation2 + $0xd0] ss:$8 sps:$4 sm:$0xff]  }
  0x1f   :  { %347 = vmatpush1.bf16.msra.mxu1 %v734_v15  ;;  %v768_v38 = vld [vmem:[#allocation2 + $0xe4] ss:$8 sps:$4 sm:$0xff]   ;;  %v770_v39 = vld [vmem:[#allocation2 + $0xe0] ss:$8 sps:$4 sm:$0xff]   ;;  %v771_v40 = vld [vmem:[#allocation2 + $0xf4] ss:$8 sps:$4 sm:$0xff]  }
  0x20   :  { %348 = vmatprep.subr.bf16.mxu1 %v735_v16  ;;  %v773_v41 = vld [vmem:[#allocation2 + $0xf0] ss:$8 sps:$4 sm:$0xff]   ;;  %v774_v42 = vld [vmem:[%s1017_s5 + $0x40] sm:$0xff]   ;;  %v776_v44 = vld [vmem:[%s1017_s5 + $0x48] sm:$0xff]   ;;  %v55_v55 = vsub.s32 0, %v54_v54  ;;  %v59_v57 = vsub.s32 1, %v54_v54 }
  0x21   :  { %v775_v43 = vld [vmem:[%s1017_s5] sm:$0xff]   ;;  %692 = vmatprep.subr.bf16.mxu0 %v774_v42  ;;  %v777_v45 = vld [vmem:[%s1017_s5 + $0x8] sm:$0xff]   ;;  %v778_v46 = vld [vmem:[%s1017_s5 + $0x50] sm:$0xff]   ;;  %vm606_vm3 = vcmask 64544   ;;  %vm617_vm4 = vcmask 97344  }
  0x22   :  { %693 = vmatpush3.bf16.msra.mxu0 %v775_v43  ;;  %v779_v47 = vld [vmem:[%s1017_s5 + $0x10] sm:$0xff]   ;;  %v780_v48 = vld [vmem:[%s1017_s5 + $0x58] sm:$0xff]   ;;  %v782_v50 = vld [vmem:[%s1017_s5 + $0x60] sm:$0xff]  }
  0x23   :  { %349 = vmatpush1.bf16.msra.mxu1 %v737_v17  ;;  %694 = vmatprep.subr.bf16.mxu0 %v776_v44  ;;  %v781_v49 = vld [vmem:[%s1017_s5 + $0x18] sm:$0xff]   ;;  %v783_v51 = vld [vmem:[%s1017_s5 + $0x20] sm:$0xff]   ;;  %v784_v52 = vld [vmem:[%s1017_s5 + $0x68] sm:$0xff]  }
  0x24   :  { %350 = vmatprep.subr.bf16.mxu1 %v738_v18  ;;  %v51_v56 = vld [vmem:[%s1014_s2] sm:$0x3]  ;;  %v785_v10 = vld [vmem:[%s1017_s5 + $0x28] sm:$0xff]   ;;  %v786_v11 = vld [vmem:[%s1017_s5 + $0x70] sm:$0xff]  }
  0x25   :  { %v56_v58 = vrot.slane %v51_v56, %v55_v55  ;;  %v60_v59 = vrot.slane %v51_v56, %v59_v57  ;;  %v787_v12 = vld [vmem:[%s1017_s5 + $0x30] sm:$0xff]   ;;  %v788_v13 = vld [vmem:[%s1017_s5 + $0x78] sm:$0xff]   ;;  %v571_v15 = vld [vmem:[%s1019_s7] sm:$0xff] }
  0x26   :  { %695 = vmatpush3.bf16.msra.mxu0 %v777_v45  ;;  %v789_v14 = vld [vmem:[%s1017_s5 + $0x38] sm:$0xff]   ;;  %575 = vrot.lane.b32.xlu0 %v571_v15, %s850_s18  ;;  %v572_v16 = vld [vmem:[%s1019_s7 + $0x8] sm:$0xff]  ;;  %v170_v17 = vld [vmem:[%s1016_s4] sm:$0x3] }
  0x27   :  { %351 = vmatpush1.bf16.msra.mxu1 %v740_v19  ;;  %696 = vmatprep.subr.bf16.mxu0 %v778_v46  ;;  %v175_v18 = vrot.slane %v170_v17, %v55_v55  ;;  %v179_v19 = vrot.slane %v170_v17, %v59_v57 }
  0x28   :  { %352 = vmatprep.subr.bf16.mxu1 %v741_v20 }
  0x2a   :  { %697 = vmatpush3.bf16.msra.mxu0 %v779_v47  ;;  %577 = vrot.lane.b32.xlu0 %v572_v16, %s850_s18 }
  0x2b   :  { %353 = vmatpush1.bf16.msra.mxu1 %v743_v21  ;;  %698 = vmatprep.subr.bf16.mxu0 %v780_v48 }
  0x2c   :  { %354 = vmatprep.subr.bf16.mxu1 %v744_v22 }
  0x2e   :  { %699 = vmatpush3.bf16.msra.mxu0 %v781_v49 }
  0x2f   :  { %355 = vmatpush1.bf16.msra.mxu1 %v746_v23  ;;  %700 = vmatprep.subr.bf16.mxu0 %v782_v50 }
  0x30   :  { %356 = vmatprep.subr.bf16.mxu1 %v747_v24 }
  0x32   :  { %701 = vmatpush3.bf16.msra.mxu0 %v783_v51 }
  0x33   :  { %357 = vmatpush1.bf16.msra.mxu1 %v749_v25  ;;  %702 = vmatprep.subr.bf16.mxu0 %v784_v52 }
  0x34   :  { %358 = vmatprep.subr.bf16.mxu1 %v750_v26 }
  0x36   :  { %703 = vmatpush3.bf16.msra.mxu0 %v785_v10 }
  0x37   :  { %359 = vmatpush1.bf16.msra.mxu1 %v752_v27  ;;  %704 = vmatprep.subr.bf16.mxu0 %v786_v11 }
  0x38   :  { %360 = vmatprep.subr.bf16.mxu1 %v753_v28 }
  0x3a   :  { %705 = vmatpush3.bf16.msra.mxu0 %v787_v12 }
  0x3b   :  { %361 = vmatpush1.bf16.msra.mxu1 %v755_v29  ;;  %706 = vmatprep.subr.bf16.mxu0 %v788_v13 }
  0x3c   :  { %362 = vmatprep.subr.bf16.mxu1 %v756_v30 }
  0x3e   :  { %707 = vmatpush3.bf16.msra.mxu0 %v789_v14 }
  0x3f   :  { %363 = vmatpush1.bf16.msra.mxu1 %v758_v31 }
  0x40   :  { %364 = vmatprep.subr.bf16.mxu1 %v759_v32 }
  0x43   :  { %365 = vmatpush1.bf16.msra.mxu1 %v761_v33 }
  0x44   :  { %366 = vmatprep.subr.bf16.mxu1 %v762_v34 }
  0x47   :  { %367 = vmatpush1.bf16.msra.mxu1 %v764_v35  ;;  %v675_v35 = vld [vmem:[%s1018_s6] ss:$0 sm:$0xff]  ;;  %s851_s6 = smov 124  }
  0x48   :  { %368 = vmatprep.subr.bf16.mxu1 %v765_v36 }
  0x4b   :  { %369 = vmatpush1.bf16.msra.mxu1 %v767_v37 }
  0x4c   :  { %370 = vmatprep.subr.bf16.mxu1 %v768_v38 }
  0x4f   :  { %371 = vmatpush1.bf16.msra.mxu1 %v770_v39 }
  0x50   :  { %372 = vmatprep.subr.bf16.mxu1 %v771_v40 }
  0x53   :  { %373 = vmatpush1.bf16.msra.mxu1 %v773_v41 }
  0x98   :  { %v576_v45 = vpop.permute.xlu0 %575 }
  0x9c   :  { %v578_v49 = vpop.permute.xlu0 %577 }
  0xef   :  { %v123_v60 = vpop.f32.mrb[0].mxu0 }
  0xf0   :  { %v124_v61 = vadd.f32 %v123_v60, %v56_v58  ;;  %v125_v62 = vpop.f32.mrb[1].mxu0 }
  0xf1   :  { %v126_v63 = vadd.f32 %v125_v62, %v60_v59  ;;  %v127_v0 = vpop.f32.mrb[2].mxu0 }
  0xf2   :  { %v128_v1 = vadd.f32 %v127_v0, %v56_v58  ;;  %v129_v2 = vpop.f32.mrb[3].mxu0  ;;  %v132_v4 = vmax.f32 %v124_v61, 0.0 }
  0xf3   :  { %v130_v3 = vadd.f32 %v129_v2, %v60_v59  ;;  %v133_v6 = vmax.f32 %v126_v63, 0.0 }
  0xf4   :  { %v134_v5 = vmax.f32 %v128_v1, 0.0 }
  0xf5   :  { %v135_v7 = vmax.f32 %v130_v3, 0.0 }
  0xf6   :  { %v136_v8 = vpack.c.bf16 %v134_v5, %v132_v4 }
  0xf7   :  { %v137_v9 = vpack.c.bf16 %v135_v7, %v133_v6 }
  0xf9   :  { %374 = vmatprep.mubr.bf16.mxu1 %v137_v9 }
  0xfa   :  { %375 = vmatmul.mubr.bf16.vlgmr.msra.gmra.mrb[0].mxu1 %v136_v8 }
 0x1cd   :  { %v376_v20 = vpop.f32.mrb[0].mxu1 }
 0x1ce   :  { %v377_v21 = vadd.f32 %v376_v20, %v175_v18  ;;  %v378_v22 = vpop.f32.mrb[1].mxu1 }
 0x1cf   :  { %v379_v23 = vadd.f32 %v378_v22, %v179_v19  ;;  %v380_v24 = vpop.f32.mrb[2].mxu1 }
 0x1d0   :  { %v381_v25 = vadd.f32 %v380_v24, %v175_v18  ;;  %v382_v26 = vpop.f32.mrb[3].mxu1  ;;  %v385_v28 = vmax.f32 %v377_v21, 0.0 }
 0x1d1   :  { %v383_v27 = vadd.f32 %v382_v26, %v179_v19  ;;  %v386_v30 = vmax.f32 %v379_v23, 0.0 }
 0x1d2   :  { %v387_v29 = vmax.f32 %v381_v25, 0.0 }
 0x1d3   :  { %v388_v31 = vmax.f32 %v383_v27, 0.0 }
 0x1d4   :  { %v389_v32 = vpack.c.bf16 %v387_v29, %v385_v28 }
 0x1d5   :  { %v390_v33 = vpack.c.bf16 %v388_v31, %v386_v30 }
 0x1d7   :  { %558 = vmatprep.mubr.bf16.mxu0 %v390_v33 }
 0x1d8   :  { %559 = vmatmul.mubr.bf16.vlgmr.msra.gmra.mrb[4].mxu0 %v389_v32 }
 0x2ab   :  { %v708_v34 = vpop.f32.mrb[4].mxu0 }
 0x2ac   :  { %v709_v36 = vpop.f32.mrb[5].mxu0 }
 0x2ad   :  { %v710_v37 = vadd.f32 %v709_v36, %v708_v34  ;;  %v711_v38 = vpop.f32.mrb[6].mxu0 }
 0x2ae   :  { %v712_v39 = vpop.f32.mrb[7].mxu0 }
 0x2af   :  { %v561_v40 = vadd.f32 %v710_v37, %v675_v35  ;;  %v713_v41 = vadd.f32 %v712_v39, %v711_v38 }
 0x2b1   :  { %v567_v42 = vmul.f32 1.442695, %v561_v40  ;;  %v564_v43 = vadd.f32 %v713_v41, %v675_v35  ;;  %600 = vrot.lane.b32.xlu0 %v561_v40, %s850_s18 }
 0x2b3   :  { %790 = vpow2.f32 %v567_v42  ;;  %v569_v44 = vmul.f32 1.442695, %v564_v43 }
 0x2b5   :  { %792 = vpow2.f32 %v569_v44 }
 0x2bd   :  { %v791_v46 = vpop.eup %790 }
 0x2be   :  { %v581_v47 = vmul.f32 %v791_v46, %v576_v45  ;;  %611 = vrot.lane.b32.xlu0 %v791_v46, %s850_s18 }
 0x2bf   :  { %v793_v48 = vpop.eup %792 }
 0x2c0   :  { %585 = vrot.lane.b32.xlu1 %v581_v47, %s851_s6  ;;  %v582_v50 = vmul.f32 %v793_v48, %v578_v49 }
 0x2c4   :  { %587 = vrot.lane.b32.xlu1 %v582_v50, %s851_s6 }
 0x2c8   :  { %602 = vrot.lane.b32.xlu1 %v564_v43, %s850_s18 }
 0x2cc   :  { %613 = vrot.lane.b32.xlu1 %v793_v48, %s850_s18 }
 0x323   :  { %v601_v55 = vpop.permute.xlu0 %600 }
 0x330   :  { %v612_v58 = vpop.permute.xlu0 %611 }
 0x332   :  { %v586_v51 = vpop.permute.xlu1 %585 }
 0x333   :  { %v591_v52 = vadd.f32 %v586_v51, %v561_v40 }
 0x335   :  { %794 = vtanh.f32 %v591_v52 }
 0x336   :  { %v588_v53 = vpop.permute.xlu1 %587 }
 0x337   :  { %v592_v54 = vadd.f32 %v588_v53, %v564_v43 }
 0x339   :  { %796 = vtanh.f32 %v592_v54 }
 0x33a   :  { %v603_v57 = vpop.permute.xlu1 %602 }
 0x33e   :  { %v614_v60 = vpop.permute.xlu1 %613 }
 0x33f   :  { %v795_v56 = vpop.eup %794 }
 0x340   :  { %596 = vst.msk [vmem:[#allocation5] sm:$0xff] %vm595_vm2, %v795_v56 }
 0x341   :  { %607 = vst.msk [vmem:[#allocation5] sm:$0xff] %vm606_vm3, %v601_v55 }
 0x342   :  { %618 = vst.msk [vmem:[#allocation5] sm:$0xff] %vm617_vm4, %v612_v58 }
 0x343   :  { %v797_v59 = vpop.eup %796 }
 0x344   :  { %597 = vst.msk [vmem:[#allocation5 + $0x8] sm:$0xff] %vm595_vm2, %v797_v59 }
 0x345   :  { %608 = vst.msk [vmem:[#allocation5 + $0x8] sm:$0xff] %vm606_vm3, %v603_v57 }
 0x346   :  { %619 = vst.msk [vmem:[#allocation5 + $0x8] sm:$0xff] %vm617_vm4, %v614_v60 }
 0x347   :  { %624 = vsyncadd [#allocation4], 128  ;;  %s852_s7 = smov [#allocation5]  }
 0x348   :  { %s625_s23 = sshll.u32 %s852_s7, 4  ;;  %s626_s23 = int_to_ptr.vmem [resolvable:$true] %s625_s23 }
 0x349   :  { %s820_s24 = scalar_lea.vmem %s626_s23, 128  ;;  %s824_s25 = scalar_lea.vmem %s626_s23, 256 }
 0x34a   :  { %p821_p8 = scmp.ne.s32.totalorder %s626_s23, %s820_s24  ;;  %p825_p9 = scmp.lt.s32.totalorder %s626_s23, %s626_s23 }
 0x34b   :  { %p826_p10 = scmp.lt.s32.totalorder %s824_s25, %s820_s24 }
 0x34d   :  { %p827_p11 = por %p826_p10, %p825_p9 }
 0x34f   :  { %p828_p12 = pnand %p827_p11, %p821_p8 }
 0x351   :  { %831 = shalt.err (!%p828_p12)
}
 0x352   :  { %s832_s27 = scalar_lea.hbm %s1020_s8, 128 }
 0x353   :  { %p833_p13 = scmp.ne.s32.totalorder %s1020_s8, %s832_s27  ;;  %p836_p0 = scmp.lt.u32.totalorder %s832_s27, %s1020_s8 }
 0x355   :  { %p838_p1 = pnand %p836_p0, %p833_p13 }
 0x357   :  { %841 = shalt.err (!%p838_p1)
}
 0x358   :  { %631 = dma.vmem_to_hbm [thread:$0]  %s626_s23, 128, %s1020_s8, [#allocation4], %s847_s15, %s847_s15, %s848_s16  }
 0x359   :  { %844 = dma.done.wait [#allocation4], 256  }
 0x35a   :  { %845 = vsyncadd [#allocation4], 4294967040 }
 0x35b   :  { %635 = vsyncpa [#allocation3], 1 }
 0x35c   :  { %636 = vsyncpa [#allocation4], 1 }

</bundles_post_ra>
